<compile_context>
chip_gen: v7x
topology: tpu7x:2x2x1
jax: 0.10.0
libtpu: 0.0.40
codegen_flags: <defaults>
</compile_context>

<pallas_src>
import jax
import jax.numpy as jnp
import numpy as np
from jax import lax
from jax.experimental import pallas as pl
from jax.experimental.pallas import tpu as pltpu


def _make_kernel(heads, dim_head, *, eps=1e-5, matmul_dtype=jnp.bfloat16,
                 approx_recip=True):
    H, dh = heads, dim_head
    inner = H * dh

    def kernel(x_ref, elo_ref, gamma_ref, beta_ref,
               wqkv_ref, we_ref, wo_ref, bo_ref, o_ref):
        # ---- LayerNorm over features (f32, computed ONCE per batch block) ----
        x = x_ref[0]                                           # (N, dim) f32
        mean = jnp.mean(x, axis=-1, keepdims=True)
        var = jnp.mean((x - mean) ** 2, axis=-1, keepdims=True)
        xn = (x - mean) * lax.rsqrt(var + eps)
        xn = xn * gamma_ref[...] + beta_ref[...]               # (N, dim)

        # ---- fused QKV projection: one wide MXU matmul ----------------------
        # Attention scale is pre-folded into the Q columns of wqkv / we.
        qkv = jnp.dot(xn.astype(matmul_dtype), wqkv_ref[...],
                      preferred_element_type=jnp.float32)      # (N, 3*inner)
        # elo bias on Q: K/V columns of we are zero, so one broadcast add.
        elo_b = jnp.dot(elo_ref[0].astype(matmul_dtype), we_ref[...],
                        preferred_element_type=jnp.float32)    # (1, 3*inner)
        qkv = qkv + elo_b

        # ---- per-head attention (static lane slices, f32 softmax) -----------
        head_outs = []
        for h in range(H):
            q = qkv[:, h * dh:(h + 1) * dh]                          # (N, dh)
            k = qkv[:, inner + h * dh:inner + (h + 1) * dh]          # (N, dh)
            v = qkv[:, 2 * inner + h * dh:2 * inner + (h + 1) * dh]  # (N, dh)

            # scores (scale already folded into q): contract over dh.
            dots = lax.dot_general(
                q.astype(matmul_dtype), k.astype(matmul_dtype),
                (((1,), (1,)), ((), ())),
                preferred_element_type=jnp.float32)                  # (N, N)
            dots = dots - jnp.max(dots, axis=-1, keepdims=True)
            e = jnp.exp(dots)
            attn = e * pl.reciprocal(jnp.sum(e, axis=-1, keepdims=True),
                                     approx=approx_recip)
            head_outs.append(
                jnp.dot(attn.astype(matmul_dtype), v.astype(matmul_dtype),
                        preferred_element_type=jnp.float32))         # (N, dh)

        # ---- single fused output projection (lane-dense store) --------------
        out_cat = jnp.concatenate(head_outs, axis=-1)                # (N, inner)
        proj = jnp.dot(out_cat.astype(matmul_dtype), wo_ref[...],
                       preferred_element_type=jnp.float32)           # (N, dim_p)
        o_ref[0] = (proj + bo_ref[...]).astype(o_ref.dtype)

    return kernel


def elo_aware_attention(x, elo_emb, params, *, heads, dim_head,
                        matmul_dtype=jnp.bfloat16, approx_recip=True):
    """Fused EloAwareAttention forward.  x: (B, N, dim), elo_emb: (B, elo_dim)."""
    B, N, dim = x.shape
    elo_dim = elo_emb.shape[-1]
    H, dh = heads, dim_head
    inner = H * dh
    scale = dh ** (-0.5)
    dim_p = ((dim + 127) // 128) * 128      # lane-dense output features

    w_qkv = params["w_qkv"]                 # (dim, 3*inner)
    w_elo = params["w_elo"]                 # (elo_dim, inner)
    w_out = params["w_out"]                 # (inner, dim)
    b_out = params["b_out"]                 # (dim,)
    gamma = params["gamma"].reshape(1, dim).astype(jnp.float32)
    beta = params["beta"].reshape(1, dim).astype(jnp.float32)

    # Fold the attention scale into the Q columns; zero-pad the elo weight over
    # the K/V columns so the elo bias is a single broadcast add in the kernel.
    wqkv_f = jnp.concatenate([w_qkv[:, :inner] * scale, w_qkv[:, inner:]],
                             axis=1).astype(matmul_dtype)          # (dim, 3*inner)
    we_f = jnp.concatenate([w_elo * scale,
                            jnp.zeros((elo_dim, 2 * inner), w_elo.dtype)],
                           axis=1).astype(matmul_dtype)            # (elo_dim, 3*inner)
    # Output projection, feature dim zero-padded to dim_p (lane-dense store).
    wo_f = jnp.pad(w_out, ((0, 0), (0, dim_p - dim))).astype(matmul_dtype)  # (inner, dim_p)
    bo_f = jnp.pad(b_out, (0, dim_p - dim)).reshape(1, dim_p).astype(jnp.float32)

    # Keep the last two block dims equal to full array dims for the elo input.
    elo3 = elo_emb.reshape(B, 1, elo_dim).astype(jnp.float32)

    kernel = _make_kernel(H, dh, matmul_dtype=matmul_dtype,
                          approx_recip=approx_recip)

    out_p = pl.pallas_call(
        kernel,
        out_shape=jax.ShapeDtypeStruct((B, N, dim_p), x.dtype),
        grid_spec=pltpu.PrefetchScalarGridSpec(
            num_scalar_prefetch=0,
            grid=(B,),
            in_specs=[
                pl.BlockSpec((1, N, dim), lambda b: (b, 0, 0)),        # x
                pl.BlockSpec((1, 1, elo_dim), lambda b: (b, 0, 0)),    # elo_emb
                pl.BlockSpec((1, dim), lambda b: (0, 0)),              # gamma
                pl.BlockSpec((1, dim), lambda b: (0, 0)),              # beta
                pl.BlockSpec((dim, 3 * inner), lambda b: (0, 0)),      # wqkv (Q scaled)
                pl.BlockSpec((elo_dim, 3 * inner), lambda b: (0, 0)),  # we (zero-padded)
                pl.BlockSpec((inner, dim_p), lambda b: (0, 0)),        # wo (padded)
                pl.BlockSpec((1, dim_p), lambda b: (0, 0)),            # bo (padded)
            ],
            out_specs=pl.BlockSpec((1, N, dim_p), lambda b: (b, 0, 0)),
        ),
        compiler_params=pltpu.CompilerParams(
            dimension_semantics=("parallel",)),
    )(x, elo3, gamma, beta, wqkv_f, we_f, wo_f, bo_f)

    return out_p[..., :dim]


def reference(x, elo_emb, params, *, heads, dim_head, eps=1e-5):
    """Pure-JAX reference mirroring the PyTorch forward (dropout=0, eval)."""
    B, N, dim = x.shape
    H, dh = heads, dim_head
    inner = H * dh
    scale = dh ** (-0.5)
    mean = jnp.mean(x, axis=-1, keepdims=True)
    var = jnp.mean((x - mean) ** 2, axis=-1, keepdims=True)
    xn = (x - mean) / jnp.sqrt(var + eps) * params["gamma"] + params["beta"]
    qkv = xn @ params["w_qkv"]
    q, k, v = jnp.split(qkv, 3, axis=-1)

    def to_heads(t):  # (B, N, inner) -> (B, H, N, dh)
        return t.reshape(B, N, H, dh).transpose(0, 2, 1, 3)

    q, k, v = map(to_heads, (q, k, v))
    elo = (elo_emb @ params["w_elo"]).reshape(B, H, 1, dh)
    q = q + elo
    dots = jnp.einsum("bhnk,bhmk->bhnm", q, k) * scale
    attn = jax.nn.softmax(dots, axis=-1)
    out = jnp.einsum("bhnm,bhmk->bhnk", attn, v)
    out = out.transpose(0, 2, 1, 3).reshape(B, N, inner)
    return out @ params["w_out"] + params["b_out"]


if __name__ == "__main__":
    # Small shapes consistent with the module.
    B, N = 2, 8
    dim = 32
    heads, dim_head = 4, 8          # inner_dim = 32 -> project_out = True
    elo_dim = 16
    inner_dim = heads * dim_head

    key = jax.random.PRNGKey(0)
    ks = jax.random.split(key, 8)

    x = jax.random.normal(ks[0], (B, N, dim), dtype=jnp.float32)
    elo_emb = jax.random.normal(ks[1], (B, elo_dim), dtype=jnp.float32)

    params = {
        "w_qkv": 0.05 * jax.random.normal(ks[2], (dim, 3 * inner_dim), jnp.float32),
        "w_elo": 0.05 * jax.random.normal(ks[3], (elo_dim, inner_dim), jnp.float32),
        "w_out": 0.05 * jax.random.normal(ks[4], (inner_dim, dim), jnp.float32),
        "b_out": 0.05 * jax.random.normal(ks[5], (dim,), jnp.float32),
        "gamma": 1.0 + 0.1 * jax.random.normal(ks[6], (dim,), jnp.float32),
        "beta": 0.1 * jax.random.normal(ks[7], (dim,), jnp.float32),
    }

    ref = reference(x, elo_emb, params, heads=heads, dim_head=dim_head)

    # Accuracy path: f32 MXU inputs + exact reciprocal.
    out_f32 = elo_aware_attention(x, elo_emb, params, heads=heads,
                                  dim_head=dim_head,
                                  matmul_dtype=jnp.float32, approx_recip=False)
    out_f32 = jax.block_until_ready(out_f32)
    np.testing.assert_allclose(np.asarray(out_f32), np.asarray(ref),
                               rtol=2e-3, atol=2e-3)

    # Performance config: bf16 MXU inputs (v6e/v7x peak) + approx reciprocal
    # (EUP slot); LayerNorm/softmax/accumulation stay f32 -> looser tolerance.
    out_bf16 = elo_aware_attention(x, elo_emb, params, heads=heads,
                                   dim_head=dim_head)
    out_bf16 = jax.block_until_ready(out_bf16)
    np.testing.assert_allclose(np.asarray(out_bf16), np.asarray(ref),
                               rtol=5e-2, atol=2e-2)

    print("KERNEL_OK")
</pallas_src>

<mosaic_0001>
module attributes {stable_mosaic.version = 11 : i64} {
  func.func @kernel(%arg0: i32, %arg1: memref<1x8x32xf32, #tpu.memory_space<vmem>>, %arg2: memref<1x1x16xf32, #tpu.memory_space<vmem>>, %arg3: memref<1x32xf32, #tpu.memory_space<vmem>>, %arg4: memref<1x32xf32, #tpu.memory_space<vmem>>, %arg5: memref<32x96xf32, #tpu.memory_space<vmem>>, %arg6: memref<16x96xf32, #tpu.memory_space<vmem>>, %arg7: memref<32x128xf32, #tpu.memory_space<vmem>>, %arg8: memref<1x128xf32, #tpu.memory_space<vmem>>, %arg9: memref<1x8x128xf32, #tpu.memory_space<vmem>>) attributes {dimension_semantics = [#tpu.dimension_semantics<parallel>], iteration_bounds = array<i64: 2>, scalar_prefetch = 0 : i64, scratch_operands = 0 : i64, tpu.core_type = #tpu.core_type<tc>, window_params = [{transform_indices = @transform_0, window_bounds = array<i64: 1, 8, 32>}, {transform_indices = @transform_1, window_bounds = array<i64: 1, 1, 16>}, {pipeline_mode = #tpu.pipeline_mode<synchronous>, transform_indices = @transform_2, window_bounds = array<i64: 1, 32>}, {pipeline_mode = #tpu.pipeline_mode<synchronous>, transform_indices = @transform_3, window_bounds = array<i64: 1, 32>}, {pipeline_mode = #tpu.pipeline_mode<synchronous>, transform_indices = @transform_4, window_bounds = array<i64: 32, 96>}, {pipeline_mode = #tpu.pipeline_mode<synchronous>, transform_indices = @transform_5, window_bounds = array<i64: 16, 96>}, {pipeline_mode = #tpu.pipeline_mode<synchronous>, transform_indices = @transform_6, window_bounds = array<i64: 32, 128>}, {pipeline_mode = #tpu.pipeline_mode<synchronous>, transform_indices = @transform_7, window_bounds = array<i64: 1, 128>}, {transform_indices = @transform_8, window_bounds = array<i64: 1, 8, 128>}]} {
    %c0 = arith.constant 0 : index
    %c0_0 = arith.constant 0 : index
    %c0_1 = arith.constant 0 : index
    %0 = vector.load %arg1[%c0, %c0_0, %c0_1] : memref<1x8x32xf32, #tpu.memory_space<vmem>>, vector<1x8x32xf32>
    %1 = vector.shape_cast %0 : vector<1x8x32xf32> to vector<8x32xf32>
    %cst = arith.constant dense<0.000000e+00> : vector<8xf32>
    %2 = vector.multi_reduction <add>, %1, %cst [1] : vector<8x32xf32> to vector<8xf32>
    %3 = vector.shape_cast %2 : vector<8xf32> to vector<8x1xf32>
    %cst_2 = arith.constant 3.200000e+01 : f32
    %4 = vector.broadcast %cst_2 : f32 to vector<8x1xf32>
    %5 = arith.divf %3, %4 : vector<8x1xf32>
    %6 = vector.broadcast %5 : vector<8x1xf32> to vector<8x32xf32>
    %7 = arith.subf %1, %6 : vector<8x32xf32>
    %8 = arith.mulf %7, %7 : vector<8x32xf32>
    %cst_3 = arith.constant dense<0.000000e+00> : vector<8xf32>
    %9 = vector.multi_reduction <add>, %8, %cst_3 [1] : vector<8x32xf32> to vector<8xf32>
    %10 = vector.shape_cast %9 : vector<8xf32> to vector<8x1xf32>
    %cst_4 = arith.constant 3.200000e+01 : f32
    %11 = vector.broadcast %cst_4 : f32 to vector<8x1xf32>
    %12 = arith.divf %10, %11 : vector<8x1xf32>
    %13 = vector.broadcast %5 : vector<8x1xf32> to vector<8x32xf32>
    %14 = arith.subf %1, %13 : vector<8x32xf32>
    %cst_5 = arith.constant 9.99999974E-6 : f32
    %15 = vector.broadcast %cst_5 : f32 to vector<8x1xf32>
    %16 = arith.addf %12, %15 : vector<8x1xf32>
    %17 = math.rsqrt %16 : vector<8x1xf32>
    %18 = vector.broadcast %17 : vector<8x1xf32> to vector<8x32xf32>
    %19 = arith.mulf %14, %18 : vector<8x32xf32>
    %c0_6 = arith.constant 0 : index
    %c0_7 = arith.constant 0 : index
    %20 = vector.load %arg3[%c0_6, %c0_7] : memref<1x32xf32, #tpu.memory_space<vmem>>, vector<1x32xf32>
    %21 = vector.broadcast %20 : vector<1x32xf32> to vector<8x32xf32>
    %22 = arith.mulf %19, %21 : vector<8x32xf32>
    %c0_8 = arith.constant 0 : index
    %c0_9 = arith.constant 0 : index
    %23 = vector.load %arg4[%c0_8, %c0_9] : memref<1x32xf32, #tpu.memory_space<vmem>>, vector<1x32xf32>
    %24 = vector.broadcast %23 : vector<1x32xf32> to vector<8x32xf32>
    %25 = arith.addf %22, %24 : vector<8x32xf32>
    %c0_10 = arith.constant 0 : index
    %c0_11 = arith.constant 0 : index
    %26 = vector.load %arg5[%c0_10, %c0_11] : memref<32x96xf32, #tpu.memory_space<vmem>>, vector<32x96xf32>
    %cst_12 = arith.constant dense<0.000000e+00> : vector<8x96xf32>
    %27 = tpu.matmul %25, %26, %cst_12 {dimension_numbers = #tpu.dot_dimension_numbers<[1], [0], [0], [1], [0, 0, 1, 1], [], []>} : vector<8x32xf32>, vector<32x96xf32>, vector<8x96xf32> -> vector<8x96xf32>
    %c0_13 = arith.constant 0 : index
    %c0_14 = arith.constant 0 : index
    %c0_15 = arith.constant 0 : index
    %28 = vector.load %arg2[%c0_13, %c0_14, %c0_15] : memref<1x1x16xf32, #tpu.memory_space<vmem>>, vector<1x1x16xf32>
    %29 = vector.shape_cast %28 : vector<1x1x16xf32> to vector<1x16xf32>
    %c0_16 = arith.constant 0 : index
    %c0_17 = arith.constant 0 : index
    %30 = vector.load %arg6[%c0_16, %c0_17] : memref<16x96xf32, #tpu.memory_space<vmem>>, vector<16x96xf32>
    %cst_18 = arith.constant dense<0.000000e+00> : vector<1x96xf32>
    %31 = tpu.matmul %29, %30, %cst_18 {dimension_numbers = #tpu.dot_dimension_numbers<[1], [0], [0], [1], [0, 0, 1, 1], [], []>} : vector<1x16xf32>, vector<16x96xf32>, vector<1x96xf32> -> vector<1x96xf32>
    %32 = vector.broadcast %31 : vector<1x96xf32> to vector<8x96xf32>
    %33 = arith.addf %27, %32 : vector<8x96xf32>
    %34 = vector.extract_strided_slice %33 {offsets = [0, 0], sizes = [8, 8], strides = [1, 1]} : vector<8x96xf32> to vector<8x8xf32>
    %35 = vector.extract_strided_slice %33 {offsets = [0, 32], sizes = [8, 8], strides = [1, 1]} : vector<8x96xf32> to vector<8x8xf32>
    %36 = vector.extract_strided_slice %33 {offsets = [0, 64], sizes = [8, 8], strides = [1, 1]} : vector<8x96xf32> to vector<8x8xf32>
    %cst_19 = arith.constant dense<0.000000e+00> : vector<8x8xf32>
    %37 = tpu.matmul %34, %35, %cst_19 {dimension_numbers = #tpu.dot_dimension_numbers<[1], [1], [0], [0], [0, 0, 1, 0], [], []>} : vector<8x8xf32>, vector<8x8xf32>, vector<8x8xf32> -> vector<8x8xf32>
    %cst_20 = arith.constant dense<0xFF800000> : vector<8xf32>
    %38 = vector.multi_reduction <maximumf>, %37, %cst_20 [1] : vector<8x8xf32> to vector<8xf32>
    %39 = vector.shape_cast %38 : vector<8xf32> to vector<8x1xf32>
    %40 = vector.broadcast %39 : vector<8x1xf32> to vector<8x8xf32>
    %41 = arith.subf %37, %40 : vector<8x8xf32>
    %42 = math.exp %41 : vector<8x8xf32>
    %cst_21 = arith.constant dense<0.000000e+00> : vector<8xf32>
    %43 = vector.multi_reduction <add>, %42, %cst_21 [1] : vector<8x8xf32> to vector<8xf32>
    %44 = vector.shape_cast %43 : vector<8xf32> to vector<8x1xf32>
    %45 = tpu.reciprocal %44 : vector<8x1xf32> -> vector<8x1xf32>
    %46 = vector.broadcast %45 : vector<8x1xf32> to vector<8x8xf32>
    %47 = arith.mulf %42, %46 : vector<8x8xf32>
    %cst_22 = arith.constant dense<0.000000e+00> : vector<8x8xf32>
    %48 = tpu.matmul %47, %36, %cst_22 {dimension_numbers = #tpu.dot_dimension_numbers<[1], [0], [0], [1], [0, 0, 1, 1], [], []>} : vector<8x8xf32>, vector<8x8xf32>, vector<8x8xf32> -> vector<8x8xf32>
    %49 = vector.extract_strided_slice %33 {offsets = [0, 8], sizes = [8, 8], strides = [1, 1]} : vector<8x96xf32> to vector<8x8xf32>
    %50 = vector.extract_strided_slice %33 {offsets = [0, 40], sizes = [8, 8], strides = [1, 1]} : vector<8x96xf32> to vector<8x8xf32>
    %51 = vector.extract_strided_slice %33 {offsets = [0, 72], sizes = [8, 8], strides = [1, 1]} : vector<8x96xf32> to vector<8x8xf32>
    %cst_23 = arith.constant dense<0.000000e+00> : vector<8x8xf32>
    %52 = tpu.matmul %49, %50, %cst_23 {dimension_numbers = #tpu.dot_dimension_numbers<[1], [1], [0], [0], [0, 0, 1, 0], [], []>} : vector<8x8xf32>, vector<8x8xf32>, vector<8x8xf32> -> vector<8x8xf32>
    %cst_24 = arith.constant dense<0xFF800000> : vector<8xf32>
    %53 = vector.multi_reduction <maximumf>, %52, %cst_24 [1] : vector<8x8xf32> to vector<8xf32>
    %54 = vector.shape_cast %53 : vector<8xf32> to vector<8x1xf32>
    %55 = vector.broadcast %54 : vector<8x1xf32> to vector<8x8xf32>
    %56 = arith.subf %52, %55 : vector<8x8xf32>
    %57 = math.exp %56 : vector<8x8xf32>
    %cst_25 = arith.constant dense<0.000000e+00> : vector<8xf32>
    %58 = vector.multi_reduction <add>, %57, %cst_25 [1] : vector<8x8xf32> to vector<8xf32>
    %59 = vector.shape_cast %58 : vector<8xf32> to vector<8x1xf32>
    %60 = tpu.reciprocal %59 : vector<8x1xf32> -> vector<8x1xf32>
    %61 = vector.broadcast %60 : vector<8x1xf32> to vector<8x8xf32>
    %62 = arith.mulf %57, %61 : vector<8x8xf32>
    %cst_26 = arith.constant dense<0.000000e+00> : vector<8x8xf32>
    %63 = tpu.matmul %62, %51, %cst_26 {dimension_numbers = #tpu.dot_dimension_numbers<[1], [0], [0], [1], [0, 0, 1, 1], [], []>} : vector<8x8xf32>, vector<8x8xf32>, vector<8x8xf32> -> vector<8x8xf32>
    %64 = vector.extract_strided_slice %33 {offsets = [0, 16], sizes = [8, 8], strides = [1, 1]} : vector<8x96xf32> to vector<8x8xf32>
    %65 = vector.extract_strided_slice %33 {offsets = [0, 48], sizes = [8, 8], strides = [1, 1]} : vector<8x96xf32> to vector<8x8xf32>
    %66 = vector.extract_strided_slice %33 {offsets = [0, 80], sizes = [8, 8], strides = [1, 1]} : vector<8x96xf32> to vector<8x8xf32>
    %cst_27 = arith.constant dense<0.000000e+00> : vector<8x8xf32>
    %67 = tpu.matmul %64, %65, %cst_27 {dimension_numbers = #tpu.dot_dimension_numbers<[1], [1], [0], [0], [0, 0, 1, 0], [], []>} : vector<8x8xf32>, vector<8x8xf32>, vector<8x8xf32> -> vector<8x8xf32>
    %cst_28 = arith.constant dense<0xFF800000> : vector<8xf32>
    %68 = vector.multi_reduction <maximumf>, %67, %cst_28 [1] : vector<8x8xf32> to vector<8xf32>
    %69 = vector.shape_cast %68 : vector<8xf32> to vector<8x1xf32>
    %70 = vector.broadcast %69 : vector<8x1xf32> to vector<8x8xf32>
    %71 = arith.subf %67, %70 : vector<8x8xf32>
    %72 = math.exp %71 : vector<8x8xf32>
    %cst_29 = arith.constant dense<0.000000e+00> : vector<8xf32>
    %73 = vector.multi_reduction <add>, %72, %cst_29 [1] : vector<8x8xf32> to vector<8xf32>
    %74 = vector.shape_cast %73 : vector<8xf32> to vector<8x1xf32>
    %75 = tpu.reciprocal %74 : vector<8x1xf32> -> vector<8x1xf32>
    %76 = vector.broadcast %75 : vector<8x1xf32> to vector<8x8xf32>
    %77 = arith.mulf %72, %76 : vector<8x8xf32>
    %cst_30 = arith.constant dense<0.000000e+00> : vector<8x8xf32>
    %78 = tpu.matmul %77, %66, %cst_30 {dimension_numbers = #tpu.dot_dimension_numbers<[1], [0], [0], [1], [0, 0, 1, 1], [], []>} : vector<8x8xf32>, vector<8x8xf32>, vector<8x8xf32> -> vector<8x8xf32>
    %79 = vector.extract_strided_slice %33 {offsets = [0, 24], sizes = [8, 8], strides = [1, 1]} : vector<8x96xf32> to vector<8x8xf32>
    %80 = vector.extract_strided_slice %33 {offsets = [0, 56], sizes = [8, 8], strides = [1, 1]} : vector<8x96xf32> to vector<8x8xf32>
    %81 = vector.extract_strided_slice %33 {offsets = [0, 88], sizes = [8, 8], strides = [1, 1]} : vector<8x96xf32> to vector<8x8xf32>
    %cst_31 = arith.constant dense<0.000000e+00> : vector<8x8xf32>
    %82 = tpu.matmul %79, %80, %cst_31 {dimension_numbers = #tpu.dot_dimension_numbers<[1], [1], [0], [0], [0, 0, 1, 0], [], []>} : vector<8x8xf32>, vector<8x8xf32>, vector<8x8xf32> -> vector<8x8xf32>
    %cst_32 = arith.constant dense<0xFF800000> : vector<8xf32>
    %83 = vector.multi_reduction <maximumf>, %82, %cst_32 [1] : vector<8x8xf32> to vector<8xf32>
    %84 = vector.shape_cast %83 : vector<8xf32> to vector<8x1xf32>
    %85 = vector.broadcast %84 : vector<8x1xf32> to vector<8x8xf32>
    %86 = arith.subf %82, %85 : vector<8x8xf32>
    %87 = math.exp %86 : vector<8x8xf32>
    %cst_33 = arith.constant dense<0.000000e+00> : vector<8xf32>
    %88 = vector.multi_reduction <add>, %87, %cst_33 [1] : vector<8x8xf32> to vector<8xf32>
    %89 = vector.shape_cast %88 : vector<8xf32> to vector<8x1xf32>
    %90 = tpu.reciprocal %89 : vector<8x1xf32> -> vector<8x1xf32>
    %91 = vector.broadcast %90 : vector<8x1xf32> to vector<8x8xf32>
    %92 = arith.mulf %87, %91 : vector<8x8xf32>
    %cst_34 = arith.constant dense<0.000000e+00> : vector<8x8xf32>
    %93 = tpu.matmul %92, %81, %cst_34 {dimension_numbers = #tpu.dot_dimension_numbers<[1], [0], [0], [1], [0, 0, 1, 1], [], []>} : vector<8x8xf32>, vector<8x8xf32>, vector<8x8xf32> -> vector<8x8xf32>
    %94 = tpu.concatenate %48, %63, %78, %93 in 1 : vector<8x8xf32>, vector<8x8xf32>, vector<8x8xf32>, vector<8x8xf32> -> vector<8x32xf32>
    %c0_35 = arith.constant 0 : index
    %c0_36 = arith.constant 0 : index
    %95 = vector.load %arg7[%c0_35, %c0_36] : memref<32x128xf32, #tpu.memory_space<vmem>>, vector<32x128xf32>
    %cst_37 = arith.constant dense<0.000000e+00> : vector<8x128xf32>
    %96 = tpu.matmul %94, %95, %cst_37 {dimension_numbers = #tpu.dot_dimension_numbers<[1], [0], [0], [1], [0, 0, 1, 1], [], []>} : vector<8x32xf32>, vector<32x128xf32>, vector<8x128xf32> -> vector<8x128xf32>
    %c0_38 = arith.constant 0 : index
    %c0_39 = arith.constant 0 : index
    %97 = vector.load %arg8[%c0_38, %c0_39] : memref<1x128xf32, #tpu.memory_space<vmem>>, vector<1x128xf32>
    %98 = vector.broadcast %97 : vector<1x128xf32> to vector<8x128xf32>
    %99 = arith.addf %96, %98 : vector<8x128xf32>
    %c0_40 = arith.constant 0 : index
    %c0_41 = arith.constant 0 : index
    %c0_42 = arith.constant 0 : index
    %100 = vector.load %arg9[%c0_40, %c0_41, %c0_42] : memref<1x8x128xf32, #tpu.memory_space<vmem>>, vector<1x8x128xf32>
    %101 = vector.shape_cast %100 : vector<1x8x128xf32> to vector<8x128xf32>
    %102 = vector.shape_cast %99 : vector<8x128xf32> to vector<1x8x128xf32>
    tpu.vector_store %arg9[%c0_40, %c0_41, %c0_42], %102 {strides = array<i32>} : memref<1x8x128xf32, #tpu.memory_space<vmem>>, vector<1x8x128xf32>,
    return
  }
  func.func @transform_0(%arg0: i32) -> (i32, i32, i32) {
    %c0_i32 = arith.constant 0 : i32
    %c0_i32_0 = arith.constant 0 : i32
    %c0_i32_1 = arith.constant 0 : i32
    return %arg0, %c0_i32, %c0_i32_0 : i32, i32, i32
  }
  func.func @transform_1(%arg0: i32) -> (i32, i32, i32) {
    %c0_i32 = arith.constant 0 : i32
    %c0_i32_0 = arith.constant 0 : i32
    %c0_i32_1 = arith.constant 0 : i32
    return %arg0, %c0_i32, %c0_i32_0 : i32, i32, i32
  }
  func.func @transform_2(%arg0: i32) -> (i32, i32) {
    %c0_i32 = arith.constant 0 : i32
    %c0_i32_0 = arith.constant 0 : i32
    %c0_i32_1 = arith.constant 0 : i32
    return %c0_i32, %c0_i32_0 : i32, i32
  }
  func.func @transform_3(%arg0: i32) -> (i32, i32) {
    %c0_i32 = arith.constant 0 : i32
    %c0_i32_0 = arith.constant 0 : i32
    %c0_i32_1 = arith.constant 0 : i32
    return %c0_i32, %c0_i32_0 : i32, i32
  }
  func.func @transform_4(%arg0: i32) -> (i32, i32) {
    %c0_i32 = arith.constant 0 : i32
    %c0_i32_0 = arith.constant 0 : i32
    %c0_i32_1 = arith.constant 0 : i32
    return %c0_i32, %c0_i32_0 : i32, i32
  }
  func.func @transform_5(%arg0: i32) -> (i32, i32) {
    %c0_i32 = arith.constant 0 : i32
    %c0_i32_0 = arith.constant 0 : i32
    %c0_i32_1 = arith.constant 0 : i32
    return %c0_i32, %c0_i32_0 : i32, i32
  }
  func.func @transform_6(%arg0: i32) -> (i32, i32) {
    %c0_i32 = arith.constant 0 : i32
    %c0_i32_0 = arith.constant 0 : i32
    %c0_i32_1 = arith.constant 0 : i32
    return %c0_i32, %c0_i32_0 : i32, i32
  }
  func.func @transform_7(%arg0: i32) -> (i32, i32) {
    %c0_i32 = arith.constant 0 : i32
    %c0_i32_0 = arith.constant 0 : i32
    %c0_i32_1 = arith.constant 0 : i32
    return %c0_i32, %c0_i32_0 : i32, i32
  }
  func.func @transform_8(%arg0: i32) -> (i32, i32, i32) {
    %c0_i32 = arith.constant 0 : i32
    %c0_i32_0 = arith.constant 0 : i32
    %c0_i32_1 = arith.constant 0 : i32
    return %arg0, %c0_i32, %c0_i32_0 : i32, i32, i32
  }
}

</mosaic_0001>

<bundles_post_ra>
// kernel: tpu_custom_call.1
= control target key start
LH: loop header
LB: loop body
LE: loop exit
PB: predicated region body
PF: predicated region fallthrough
CT: control target
= control target key end

     0   :  { %s2416_s0 = inlined_call_operand.hbm [shape: f32[2,8,32], index: 0, kind: input, shape index: {}]   ;;  %s2417_s1 = inlined_call_operand.vmem [shape: f32[2,1,16], index: 1, kind: input, shape index: {}]   ;;  %s2418_s2 = inlined_call_operand.hbm [shape: f32[1,32], index: 2, kind: input, shape index: {}]   ;;  %s2419_s3 = inlined_call_operand.hbm [shape: f32[1,32], index: 3, kind: input, shape index: {}]   ;;  %s2420_s4 = inlined_call_operand.hbm [shape: f32[32,96], index: 4, kind: input, shape index: {}]   ;;  %s2421_s5 = inlined_call_operand.vmem [shape: f32[16,96], index: 5, kind: input, shape index: {}]   ;;  %s2422_s6 = inlined_call_operand.hbm [shape: f32[32,128], index: 6, kind: input, shape index: {}]   ;;  %s2423_s7 = inlined_call_operand.vmem [shape: f32[1,128], index: 7, kind: input, shape index: {}]   ;;  %s2424_s8 = inlined_call_operand.hbm [shape: f32[2,8,128], index: 8, kind: output, shape index: {}]  }
   0x1   :  { %2428 = sst [smem:[#allocation16_spill]] %s2418_s2 }
   0x2   :  { %13 = vsyncpa [#allocation3], 0 }
   0x3   :  { %15 = vsyncpa [#allocation3 + $0x1], 0 }
   0x4   :  { %16 = vsyncpa [#allocation6], 0 }
   0x5   :  { %17 = vsyncpa [#allocation9], 0 }
   0x6   :  { %18 = vsyncpa [#allocation4], 0 }
   0x7   :  { %20 = vsyncpa [#allocation4 + $0x1], 0  ;;  %s2034_s27 = smov 0   ;;  %s2036_s28 = smov 0  }
   0x8   :  { %s2038_s29 = smov 0   ;;  %s2040_s30 = smov 0  }
   0x9 LB: > { %s1964_s9 = smov [#allocation5]   ;;  %s2055_s11 = sadd.s32 4294967295, %s1962_s30   ;;  %s1962_s30 = sphi %s2040_s30, %s2450_s30   ;;  %s1958_s29 = sphi %s2038_s29, %s2449_s29   ;;  %s1954_s28 = sphi %s2036_s28, %s2448_s28   ;;  %s1950_s27 = sphi %s2034_s27, %s2447_s27  }
   0xa   : > { %s248_s10 = sshll.u32 %s1964_s9, 4  ;;  %p1472_p0 = scmp.ge.s32.totalorder %s1962_s30, 1  ;;  %s2060_s10 = int_to_ptr.vmem [resolvable:$true] %s248_s10 }
   0xb   : > { %p2425_p1 = scmp.eq.s32.totalorder %s2055_s11, 0  ;;  %p235_p2 = scmp.lt.s32.totalorder %s1962_s30, 3 }
   0xc   : > { %s1965_s13 = smov [#allocation8]   ;;  %s1966_s16 = smov [#allocation7]  }
   0xd   : > { %p2062_p3 = pnand %p1472_p0, %p235_p2  ;;  %s269_s14 = sshll.u32 %s1965_s13, 4  ;;  %s2069_s14 = int_to_ptr.vmem [resolvable:$true] %s269_s14 }
   0xe   : > { %s259_s17 = sshll.u32 %s1966_s16, 4  ;;  %s2431_s2 = sld [smem:[#allocation16_spill]]  ;;  %s2077_s17 = int_to_ptr.vmem [resolvable:$true] %s259_s17 }
   0xf   : > { %s2429_s12 = scalar_select %p2062_p3, 1, 0 }
  0x10   : > { %p1642_p5 = pneg %p2062_p3 }
  0x12   : > { %p2073_p6 = pnand %p1642_p5, %p2425_p1 }
  0x14   : > { %s1746_s20 = scalar_lea.hbm %s2431_s2, 16  ;;  %p2087_p8 = pneg %p2073_p6 }
  0x15   : > { %p1747_p7 = scmp.ne.s32.totalorder %s2431_s2, %s1746_s20  ;;  %p1753_p11 = scmp.lt.u32.totalorder %s1746_s20, %s2431_s2 }
  0x17   : > { %p1749_p9 = pnand %p2087_p8, %p1747_p7 }
  0x19   : > { %p1750_p10 = pneg %p1749_p9 }
  0x1b   : > { %p1755_p12 = pnand %p1753_p11, %p1750_p10 }
  0x1d   : > { %1758 = shalt.err (!%p1755_p12)
}
  0x1e   : > { %s1759_s26 = scalar_lea.vmem %s2060_s10, 16  ;;  %s1766_s9 = scalar_lea.vmem %s2060_s10, 32 }
  0x1f   : > { %p1760_p13 = scmp.ne.s32.totalorder %s2060_s10, %s1759_s26  ;;  %p1767_p5 = scmp.lt.s32.totalorder %s2060_s10, %s2060_s10 }
  0x20   : > { %p1768_p7 = scmp.lt.s32.totalorder %s1766_s9, %s1759_s26 }
  0x21   : > { %p1762_p0 = pnand %p1760_p13, %p2087_p8 }
  0x22   : > { %p1769_p9 = por %p1768_p7, %p1767_p5 }
  0x23   : > { %p1763_p2 = pneg %p1762_p0 }
  0x25   : > { %p1770_p4 = pnand %p1769_p9, %p1763_p2 }
  0x27   : > { %1773 = shalt.err (!%p1770_p4)
}
  0x28   : > { %1645 = dma.hbm_to_vmem [thread:$0]  (!%p2073_p6), %s2431_s2, 16, %s2060_s10, [#allocation6]  }
  0x29   : > { %s1774_s20 = scalar_lea.hbm %s2420_s4, 512 }
  0x2a   : > { %p1775_p10 = scmp.ne.s32.totalorder %s2420_s4, %s1774_s20  ;;  %p1781_p4 = scmp.lt.u32.totalorder %s1774_s20, %s2420_s4 }
  0x2c   : > { %p1777_p11 = pnand %p1775_p10, %p2087_p8 }
  0x2e   : > { %p1778_p12 = pneg %p1777_p11 }
  0x30   : > { %p1783_p13 = pnand %p1781_p4, %p1778_p12 }
  0x32   : > { %1786 = shalt.err (!%p1783_p13)
}
  0x33   : > { %s1787_s10 = scalar_lea.vmem %s2069_s14, 512  ;;  %p1795_p7 = scmp.lt.s32.totalorder %s2069_s14, %s2069_s14 }
  0x34   : > { %p1788_p0 = scmp.ne.s32.totalorder %s2069_s14, %s1787_s10  ;;  %p1796_p9 = scmp.lt.s32.totalorder %s1787_s10, %s1787_s10 }
  0x36   : > { %p1790_p2 = pnand %p1788_p0, %p2087_p8  ;;  %p1797_p10 = por %p1796_p9, %p1795_p7 }
  0x38   : > { %p1791_p5 = pneg %p1790_p2 }
  0x3a   : > { %p1798_p11 = pnand %p1797_p10, %p1791_p5 }
  0x3c   : > { %1801 = shalt.err (!%p1798_p11)
}
  0x3d   : > { %s1967_s26 = smov 128   ;;  %s1968_s9 = smov 8  }
  0x3e   : > { %1651 = dma.hbm_to_vmem [thread:$0]  (!%p2073_p6), %s2420_s4, 512, %s2069_s14, [#allocation9], %s1967_s26, %s1967_s26, %s1968_s9  }
  0x3f   : > { %s1802_s20 = scalar_lea.hbm %s2419_s3, 16 }
  0x40   : > { %p1803_p12 = scmp.ne.s32.totalorder %s2419_s3, %s1802_s20  ;;  %p1809_p0 = scmp.lt.u32.totalorder %s1802_s20, %s2419_s3 }
  0x42   : > { %p1805_p4 = pnand %p1803_p12, %p2087_p8 }
  0x44   : > { %p1806_p13 = pneg %p1805_p4 }
  0x46   : > { %p1811_p2 = pnand %p1809_p0, %p1806_p13 }
  0x48   : > { %1814 = shalt.err (!%p1811_p2)
}
  0x49   : > { %s1815_s14 = scalar_lea.vmem %s2077_s17, 16  ;;  %s1822_s10 = scalar_lea.vmem %s2077_s17, 32 }
  0x4a   : > { %p1816_p5 = scmp.ne.s32.totalorder %s2077_s17, %s1815_s14  ;;  %p1823_p10 = scmp.lt.s32.totalorder %s2077_s17, %s2077_s17 }
  0x4b   : > { %p1824_p11 = scmp.lt.s32.totalorder %s1822_s10, %s1815_s14 }
  0x4c   : > { %p1818_p7 = pnand %p1816_p5, %p2087_p8 }
  0x4d   : > { %p1825_p12 = por %p1824_p11, %p1823_p10 }
  0x4e   : > { %p1819_p9 = pneg %p1818_p7 }
  0x50   : > { %p1826_p4 = pnand %p1825_p12, %p1819_p9 }
  0x52   : > { %1829 = shalt.err (!%p1826_p4)
}
  0x53   : > { %1648 = dma.hbm_to_vmem [thread:$0]  (!%p2073_p6), %s2419_s3, 16, %s2077_s17, [#allocation6]  }
  0x54   : > { %s1969_s18 = smov [#allocation10]   ;;  %s1830_s22 = scalar_lea.hbm %s2422_s6, 512 }
  0x55   : > { %s285_s19 = sshll.u32 %s1969_s18, 4  ;;  %p1831_p13 = scmp.ne.s32.totalorder %s2422_s6, %s1830_s22  ;;  %s286_s19 = int_to_ptr.vmem [resolvable:$true] %s285_s19 }
  0x56   : > { %p1837_p5 = scmp.lt.u32.totalorder %s1830_s22, %s2422_s6 }
  0x57   : > { %p1833_p0 = pnand %p1831_p13, %p2087_p8 }
  0x59   : > { %p1834_p2 = pneg %p1833_p0 }
  0x5b   : > { %p1839_p7 = pnand %p1837_p5, %p1834_p2 }
  0x5d   : > { %1842 = shalt.err (!%p1839_p7)
}
  0x5e   : > { %s1843_s17 = scalar_lea.vmem %s286_s19, 512  ;;  %p1851_p12 = scmp.lt.s32.totalorder %s286_s19, %s286_s19 }
  0x5f   : > { %p1844_p9 = scmp.ne.s32.totalorder %s286_s19, %s1843_s17  ;;  %p1852_p4 = scmp.lt.s32.totalorder %s1843_s17, %s1843_s17 }
  0x61   : > { %p1846_p10 = pnand %p1844_p9, %p2087_p8  ;;  %p1853_p1 = por %p1852_p4, %p1851_p12 }
  0x63   : > { %p1847_p11 = pneg %p1846_p10 }
  0x65   : > { %p1854_p3 = pnand %p1853_p1, %p1847_p11 }
  0x67   : > { %1857 = shalt.err (!%p1854_p3)
}
  0x68   : > { %1654 = dma.hbm_to_vmem [thread:$0]  (!%p2073_p6), %s2422_s6, 512, %s286_s19, [#allocation9], %s1967_s26, %s1967_s26, %s1968_s9  }
  0x69   : > { %s1471_s15 = sadd.s32 4294967294, %s1962_s30   ;;  %s2182_s23 = sadd.s32 1, %s1962_s30  }
  0x6a   : > { %s30_s18 = ssub.s32 %s1962_s30, %s2182_s23  ;;  %s33_s20 = sadd.s32 1, %s1958_s29 }
  0x6b   : > { %p31_p1 = scmp.eq.s32.totalorder %s30_s18, 0  ;;  %p40_p3 = scmp.ne.s32.totalorder %s1958_s29, %s1954_s28 }
  0x6c   : > { %p41_p8 = scmp.eq.s32.totalorder %s1962_s30, 0  ;;  %p46_p13 = scmp.ne.s32.totalorder %s1954_s28, %s1950_s27 }
  0x6d   : > { %s2193_s21 = scalar_select %p31_p1, %s1958_s29, %s33_s20  }
  0x6e   : > { %p2195_p0 = por %p41_p8, %p40_p3  ;;  %p2434_p2 = scmp.eq.s32.totalorder %s2055_s11, 0 }
  0x6f   : > { %p222_p5 = scmp.eq.s32.totalorder %s2055_s11, 1  ;;  %p228_p7 = scmp.eq.s32.totalorder %s1471_s15, 1 }
  0x70   : > { %p2201_p6 = por %p2434_p2, %p46_p13  ;;  %p1667_p9 = scmp.lt.s32.totalorder %s1962_s30, 2 }
  0x71   : > { %s302_s9 = sand.u32 1, %s1958_s29   ;;  %p2208_p10 = por %p222_p5, %p40_p3 }
  0x72   : > { %p2212_p11 = por %p228_p7, %p46_p13  ;;  %s1478_s25 = sshll.u32 %s302_s9, 3 }
  0x73   : > { %s2436_s19 = scalar_select %p2208_p10, 1, 0 }
  0x74   : > { %s2437_s24 = scalar_select %p2212_p11, 1, 0 }
  0x75   : > { %s1479_s14 = sshll.u32 %s1962_s30, 7  ;;  %s306_s16 = scalar_lea.vmem [#allocation2], %s1478_s25 }
  0x76   : > { %s2220_s13 = scalar_lea.hbm %s2416_s0, %s1479_s14  ;;  %s313_s15 = sshll.u32 %s306_s16, 4  ;;  %s2222_s15 = int_to_ptr.vmem [resolvable:$true] %s313_s15 }
  0x77   : > { %p2226_p12 = pnand %p1667_p9, %p2195_p0  ;;  %s303_s20 = scalar_lea.sflag [#allocation3], %s302_s9 }
  0x78   : > { %s1858_s2 = scalar_lea.hbm %s2220_s13, 128  ;;  %s1863_s10 = scalar_lea.hbm %s2416_s0, 256 }
  0x79   : > { %p1859_p4 = scmp.ne.s32.totalorder %s2220_s13, %s1858_s2  ;;  %p1860_p1 = pneg %p2226_p12 }
  0x7a   : > { %p1864_p13 = scmp.lt.u32.totalorder %s2220_s13, %s2416_s0  ;;  %p1865_p0 = scmp.lt.u32.totalorder %s1863_s10, %s1858_s2 }
  0x7b   : > { %p1861_p3 = pnand %p1860_p1, %p1859_p4  ;;  %p1867_p5 = scmp.lt.u32.totalorder %s1858_s2, %s2220_s13 }
  0x7c   : > { %p1866_p2 = por %p1865_p0, %p1864_p13 }
  0x7d   : > { %p1862_p8 = pneg %p1861_p3 }
  0x7e   : > { %p1868_p7 = por %p1867_p5, %p1866_p2 }
  0x80   : > { %p1869_p9 = pnand %p1868_p7, %p1862_p8 }
  0x82   : > { %1872 = shalt.err (!%p1869_p9)
}
  0x83   : > { %s1873_s9 = scalar_lea.vmem %s2222_s15, 128  ;;  %s1970_s16 = smov [#allocation2]  }
  0x84   : > { %p1874_p4 = scmp.ne.s32.totalorder %s2222_s15, %s1873_s9  ;;  %s1878_s25 = sshll.u32 %s1970_s16, 4  ;;  %s1879_s25 = int_to_ptr.vmem [resolvable:$false] %s1878_s25 }
  0x85   : > { %s1880_s14 = scalar_lea.vmem %s1879_s25, 256  ;;  %p1881_p10 = scmp.lt.s32.totalorder %s2222_s15, %s1879_s25 }
  0x86   : > { %p1876_p3 = pnand %p1874_p4, %p1860_p1  ;;  %p1882_p13 = scmp.lt.s32.totalorder %s1880_s14, %s1873_s9 }
  0x88   : > { %p1877_p11 = pneg %p1876_p3  ;;  %p1883_p0 = por %p1882_p13, %p1881_p10 }
  0x8a   : > { %p1884_p2 = pnand %p1883_p0, %p1877_p11 }
  0x8c   : > { %1887 = shalt.err (!%p1884_p2)
}
  0x8d   : > { %1658 = dma.hbm_to_vmem [thread:$0]  (!%p2226_p12), %s2220_s13, 128, %s2222_s15, %s303_s20  }
  0x8e   : > { %p2439_p8 = scmp.ne.s32.totalorder %s2429_s12, 0 }
  0x8f   : > { %s2258_s2 = sand.u32 (!%p2439_p8), 1, %s1954_s28  }
  0x90   : > { %328 = sbr.rel (%p2439_p8) target bundleno = 1903 (0x76f), region = 52  ;;  %s1481_s10 = sshll.u32 (!%p2439_p8), %s2258_s2, 3 }
  0x91   : > { %s331_s22 = scalar_lea.sflag (!%p2439_p8), [#allocation3], %s2258_s2  ;;  %s334_s17 = scalar_lea.vmem (!%p2439_p8), [#allocation2], %s1481_s10 }
  0x97   : > { %1933 = dma.done.wait (%p2201_p6), %s331_s22, 128  }
  0x98   : > { %1935 = vsyncadd (%p2201_p6), %s331_s22, 4294967168  ;;  %p2440_p10 = scmp.eq.s32.totalorder %s2055_s11, 0 }
  0x9a   : > { %1937 = dma.done.wait (%p2440_p10), [#allocation6], 32   ;;  %p2441_p11 = pmov %p2440_p10 }
  0x9b   : > { %p2442_p12 = pmov %p2440_p10 }
  0x9c   : > { %1939 = vsyncadd (%p2441_p11), [#allocation6], 4294967264 }
  0x9d   : > { %1941 = dma.done.wait (%p2442_p12), [#allocation9], 1024   ;;  %p2443_p1 = pmov %p2440_p10 }
  0x9e   : > { %vm390_vm0 = vcmask 261120   ;;  %v389_v0 = vld [vmem:[%s334_s17] sm:$0xff]  ;;  %v421_v7 = vld [vmem:[#allocation8] sm:$0xff]  ;;  %v1971_v10 = vmov 0.0|0.0   ;;  %p386_p6 = scmp.lt.s32.totalorder %s2055_s11, 1  ;;  %vm1972_vm1 = vmmov 0   ;;  %v502_v30 = vlaneseq }
  0x9f   : > { %1943 = vsyncadd (%p2443_p1), [#allocation9], 4294966272  ;;  %v391_v1 = vsel %vm390_vm0, %v389_v0, 0.0  ;;  %v422_v8 = vld [vmem:[#allocation8 + $0x8] sm:$0xff]  ;;  %1610 = vmatprep.subr.bf16.mxu1 %v1971_v10  ;;  %1607 = vmatprep.subr.bf16.mxu0 %v1971_v10  ;;  %v427_v12 = vld [vmem:[%s2421_s5 + $0x8] sm:$0xff]  ;;  %v1973_v16 = vmov 0.0  }
  0xa0   : > { %392 = vadd.xlane.f32.xlu0 %v391_v1  ;;  %v426_v9 = vld [vmem:[%s2421_s5] sm:$0xff]  ;;  %v1611_v11 = vpack.c.bf16 %v422_v8, %v421_v7  ;;  %v424_v14 = vld [vmem:[#allocation8 + $0x18] sm:$0xff]  ;;  %1542 = vmatprep.mubr.msk.f32.mxu0 %vm1972_vm1, %v1973_v16  ;;  %s387_s18 = scalar_select %p386_p6, %s2055_s11, 1  ;;  %vm428_vm2 = vcmask 130048   ;;  %v503_v31 = vshrl.u32 %v502_v30, 7  ;;  %vm582_vm3 = vcmask 64512  }
  0xa1   : > { %v423_v13 = vld [vmem:[#allocation8 + $0x10] sm:$0xff]  ;;  %v1608_v15 = vpack.c.bf16 %v427_v12, %v426_v9  ;;  %1553 = vmatprep.mubr.msk.f32.mxu1 %vm1972_vm1, %v1973_v16  ;;  %v1487_v23 = vld [vmem:[#allocation5] ss:$0 sm:$0xff]  ;;  %v1488_v25 = vld [vmem:[#allocation7] ss:$0 sm:$0xff]  ;;  %s1974_s25 = smov 120  }
  0xa2   : > { %1612 = vmatpush3.bf16.msra.mxu1 %v1611_v11  ;;  %v1614_v17 = vpack.c.bf16 %v424_v14, %v423_v13  ;;  %s388_s16 = scalar_lea.vmem %s2417_s1, %s387_s18  ;;  %v504_v32 = vsub.s32 0, %v503_v31  ;;  %s1975_s14 = smov 96   ;;  %v1255_v30 = vld [vmem:[#allocation10] sm:$0xff]  ;;  %v1256_v31 = vld [vmem:[#allocation10 + $0x8] sm:$0xff]  ;;  %vm1253_vm4 = vcmask 195584  }
  0xa3   : > { %1609 = vmatpush3.bf16.msra.mxu0 %v1608_v15  ;;  %1613 = vmatprep.subr.bf16.mxu1 %v1971_v10  ;;  %v425_v18 = vld [vmem:[%s388_s16] sm:$0x1]  ;;  %s1976_s22 = smov 88   ;;  %s1977_s17 = smov 80  }
  0xa4   : > { %1556 = vmatprep.subr.mxu0 %v1973_v16  ;;  %s1978_s12 = smov 112   ;;  %s1979_s26 = smov 72  }
  0xa5   : > { %s1980_s13 = smov 104   ;;  %s1981_s15 = smov 64  }
  0xa6   : > { %1543 = vmatmul.mubr.msk.f32.vlgmr.msra.gmra.mrb[0].mxu0 %vm428_vm2, %v425_v18  ;;  %1615 = vmatpush3.bf16.msra.mxu1 %v1614_v17  ;;  %s1982_s18 = smov 48   ;;  %s1983_s20 = smov 40  }
  0xa7   : > { %1558 = vmatprep.mubr.msk.f32.mxu0 %vm1972_vm1, %v1973_v16  ;;  %1566 = vmatprep.subr.mxu1 %v1973_v16  ;;  %s1984_s9 = smov 56   ;;  %s1985_s16 = smov 8  }
  0xa8   : > { %p2444_p7 = scmp.ne.s32.totalorder %s2436_s19, 0 }
 0x12d   : > { %v393_v2 = vpop.xlane.xlu0 %392 }
 0x12e   : > { %v395_v3 = vmul.f32 0.03125, %v393_v2 }
 0x130   : > { %v396_v4 = vsub.f32 %v389_v0, %v395_v3 }
 0x132   : > { %v397_v5 = vmul.f32 %v396_v4, %v396_v4 }
 0x134   : > { %v398_v6 = vsel %vm390_vm0, %v397_v5, 0.0 }
 0x135   : > { %399 = vadd.xlane.f32.xlu0 %v398_v6 }
 0x179   : > { %v498_v28 = vpop.f32.mrb[0].mxu0 }
 0x17a   : > { %v1544_v29 = vpop.f32.mrb[1].mxu0  ;;  %v505_v33 = vrot.slane %v498_v28, %v504_v32  ;;  %v1617_v32 = vpack.c.bf16 %v1256_v31, %v1255_v30 }
 0x1c2   : > { %v400_v19 = vpop.xlane.xlu0 %399 }
 0x1c3   : > { %v401_v20 = vmul.f32 0.03125, %v400_v19 }
 0x1c5   : > { %v402_v21 = vadd.f32 1e-05, %v401_v20 }
 0x1c7   : > { %1728 = vrsqrt.f32 %v402_v21 }
 0x1d1   : > { %v1729_v22 = vpop.eup %1728 }
 0x1d2   : > { %v404_v24 = vmul.f32 %v1729_v22, %v396_v4 }
 0x1d4   : > { %v412_v26 = vmul.f32 %v1487_v23, %v404_v24 }
 0x1d6   : > { %v420_v27 = vadd.f32 %v1488_v25, %v412_v26 }
 0x1d8   : > { %1554 = vmatmul.mubr.msk.f32.vlgmr.msra.gmra.mrb[0].mxu1 %vm390_vm0, %v420_v27 }
 0x1d9   : > { %1568 = vmatprep.mubr.msk.f32.mxu1 %vm1972_vm1, %v1973_v16 }
 0x2ab   : > { %v575_v34 = vpop.f32.mrb[0].mxu1 }
 0x2ac   : > { %v2304_v35 = vadd.f32 %v575_v34, %v505_v33  ;;  %v1555_v36 = vpop.f32.mrb[1].mxu1 }
 0x2ad   : > { %v1258_v36 = vld [vmem:[#allocation10 + $0x18] sm:$0xff] }
 0x2ae   : > { %744 = vrot.lane.b32.xlu0 %v2304_v35, %s1974_s25  ;;  %580 = vrot.lane.b32.xlu1 %v2304_v35, %s1975_s14  ;;  %s1986_s25 = smov 16   ;;  %s1987_s14 = smov 24  }
 0x2b2   : > { %746 = vrot.lane.b32.xlu1 %v2304_v35, %s1976_s22 }
 0x2b6   : > { %911 = vrot.lane.b32.xlu1 %v2304_v35, %s1977_s17 }
 0x2ba   : > { %909 = vrot.lane.b32.xlu1 %v2304_v35, %s1978_s12  ;;  %s1506_s12 = sshll.u32 %s2055_s11, 7  ;;  %s1988_s11 = smov [#allocation11]  }
 0x2be   : > { %1076 = vrot.lane.b32.xlu1 %v2304_v35, %s1979_s26  ;;  %s385_s26 = scalar_lea.vmem [#allocation11], %s1481_s10  ;;  %s1892_s10 = sshll.u32 %s1988_s11, 4  ;;  %s1893_s10 = int_to_ptr.vmem [resolvable:$false] %s1892_s10 }
 0x2c2   : > { %1074 = vrot.lane.b32.xlu1 %v2304_v35, %s1980_s13  ;;  %s1354_s13 = sshll.u32 %s385_s26, 4  ;;  %s2374_s13 = int_to_ptr.vmem [resolvable:$true] %s1354_s13 }
 0x2c3   : > { %p1895_p3 = scmp.lt.s32.totalorder %s2374_s13, %s1893_s10 }
 0x320   : > { %v581_v37 = vpop.permute.xlu1 %580  ;;  %v745_v39 = vpop.permute.xlu0 %744 }
 0x321   : > { %1557 = vmatpush3.xpose.msk.msra.mxu0 %vm582_vm3, %v581_v37 }
 0x322   : > { %1561 = vmatprep.subr.mxu0 %v1973_v16 }
 0x324   : > { %1559 = vmatmul.mubr.msk.f32.vlgmr.msra.gmra.mrb[2].mxu0 %vm582_vm3, %v2304_v35  ;;  %v747_v38 = vpop.permute.xlu1 %746 }
 0x325   : > { %1567 = vmatpush3.xpose.msk.msra.mxu1 %vm582_vm3, %v747_v38  ;;  %1563 = vmatprep.mubr.msk.f32.mxu0 %vm1972_vm1, %v1973_v16 }
 0x326   : > { %1576 = vmatprep.subr.mxu1 %v1973_v16 }
 0x328   : > { %1569 = vmatmul.mubr.msk.f32.vlgmr.msra.gmra.mrb[2].mxu1 %vm582_vm3, %v745_v39  ;;  %v912_v40 = vpop.permute.xlu1 %911 }
 0x329   : > { %1577 = vmatpush3.xpose.msk.msra.mxu1 %vm582_vm3, %v912_v40  ;;  %1578 = vmatprep.mubr.msk.f32.mxu1 %vm1972_vm1, %v1973_v16 }
 0x32a   : > { %1586 = vmatprep.subr.mxu1 %v1973_v16 }
 0x32c   : > { %v910_v41 = vpop.permute.xlu1 %909 }
 0x32d   : > { %1579 = vmatmul.mubr.msk.f32.vlgmr.msra.gmra.mrb[4].mxu1 %vm582_vm3, %v910_v41 }
 0x32e   : > { %1588 = vmatprep.mubr.msk.f32.mxu1 %vm1972_vm1, %v1973_v16 }
 0x330   : > { %v1077_v42 = vpop.permute.xlu1 %1076 }
 0x331   : > { %1587 = vmatpush3.xpose.msk.msra.mxu1 %vm582_vm3, %v1077_v42 }
 0x332   : > { %1616 = vmatprep.subr.bf16.mxu1 %v1971_v10 }
 0x334   : > { %v1075_v43 = vpop.permute.xlu1 %1074 }
 0x335   : > { %1589 = vmatmul.mubr.msk.f32.vlgmr.msra.gmra.mrb[6].mxu1 %vm582_vm3, %v1075_v43 }
 0x336   : > { %1604 = vmatprep.mubr.msk.f32.mxu1 %vm1972_vm1, %v1973_v16  ;;  %1618 = vmatpush3.bf16.msra.mxu1 %v1617_v32 }
 0x337   : > { %1619 = vmatprep.subr.bf16.mxu1 %v1971_v10 }
 0x3f7   : > { %v653_v44 = vpop.f32.mrb[2].mxu0 }
 0x3f8   : > { %v1560_v45 = vpop.f32.mrb[3].mxu0  ;;  %v657_v46 = vsel %vm582_vm3, %v653_v44, -inf }
 0x3f9   : > { %658 = vmax.xlane.f32.xlu1 %v657_v46 }
 0x3fb   : > { %v818_v47 = vpop.f32.mrb[2].mxu1 }
 0x3fc   : > { %v1570_v48 = vpop.f32.mrb[3].mxu1  ;;  %v822_v49 = vsel %vm582_vm3, %v818_v47, -inf }
 0x3fd   : > { %823 = vmax.xlane.f32.xlu0 %v822_v49  ;;  %v1503_v48 = vld [vmem:[%s2423_s7] ss:$0 sm:$0xff] }
 0x400   : > { %v983_v50 = vpop.f32.mrb[4].mxu1 }
 0x401   : > { %v1580_v51 = vpop.f32.mrb[5].mxu1  ;;  %v987_v52 = vsel %vm582_vm3, %v983_v50, -inf }
 0x402   : > { %988 = vmax.xlane.f32.xlu1 %v987_v52 }
 0x408   : > { %v1148_v53 = vpop.f32.mrb[6].mxu1 }
 0x409   : > { %v1590_v54 = vpop.f32.mrb[7].mxu1  ;;  %v1152_v55 = vsel %vm582_vm3, %v1148_v53, -inf }
 0x40a   : > { %1153 = vmax.xlane.f32.xlu0 %v1152_v55 }
 0x413   : > { %668 = vrot.lane.b32.xlu1 %v2304_v35, %s1981_s15 }
 0x486   : > { %v659_v56 = vpop.xlane.xlu1 %658 }
 0x487   : > { %v660_v57 = vsub.f32 %v653_v44, %v659_v56 }
 0x489   : > { %v661_v58 = vmul.f32 1.442695, %v660_v57 }
 0x48a   : > { %v824_v59 = vpop.xlane.xlu0 %823 }
 0x48b   : > { %1730 = vpow2.f32 %v661_v58  ;;  %v825_v60 = vsub.f32 %v818_v47, %v824_v59 }
 0x48d   : > { %v826_v61 = vmul.f32 1.442695, %v825_v60 }
 0x48f   : > { %1732 = vpow2.f32 %v826_v61  ;;  %v989_v62 = vpop.xlane.xlu1 %988 }
 0x490   : > { %v990_v63 = vsub.f32 %v983_v50, %v989_v62 }
 0x492   : > { %v991_v0 = vmul.f32 1.442695, %v990_v63 }
 0x493   : > { %v669_v1 = vpop.permute.xlu1 %668 }
 0x494   : > { %1734 = vpow2.f32 %v991_v0  ;;  %1562 = vmatpush3.msra.mxu0 %v669_v1 }
 0x495   : > { %v1731_v2 = vpop.eup %1730  ;;  %1571 = vmatprep.subr.mxu0 %v1973_v16 }
 0x496   : > { %v663_v3 = vsel %vm582_vm3, %v1731_v2, 0.0 }
 0x497   : > { %664 = vadd.xlane.f32.xlu1 %v663_v3  ;;  %v1154_v4 = vpop.xlane.xlu0 %1153 }
 0x498   : > { %v1155_v5 = vsub.f32 %v1148_v53, %v1154_v4 }
 0x499   : > { %v1733_v6 = vpop.eup %1732 }
 0x49a   : > { %v1156_v7 = vmul.f32 1.442695, %v1155_v5  ;;  %v828_v8 = vsel %vm582_vm3, %v1733_v6, 0.0 }
 0x49b   : > { %829 = vadd.xlane.f32.xlu0 %v828_v8 }
 0x49c   : > { %1736 = vpow2.f32 %v1156_v7 }
 0x49e   : > { %v1735_v9 = vpop.eup %1734 }
 0x49f   : > { %v993_v11 = vsel %vm582_vm3, %v1735_v9, 0.0 }
 0x4a0   : > { %994 = vadd.xlane.f32.xlu1 %v993_v11 }
 0x4a6   : > { %v1737_v12 = vpop.eup %1736 }
 0x4a7   : > { %v1158_v13 = vsel %vm582_vm3, %v1737_v12, 0.0 }
 0x4a8   : > { %1159 = vadd.xlane.f32.xlu0 %v1158_v13 }
 0x4b1   : > { %998 = vrot.lane.b32.xlu1 %v2304_v35, %s1982_s18 }
 0x4b5   : > { %1163 = vrot.lane.b32.xlu1 %v2304_v35, %s1983_s20  ;;  %s2372_s20 = scalar_lea.hbm %s2424_s8, %s1506_s12 }
 0x4be   : > { %833 = vrot.lane.b32.xlu0 %v2304_v35, %s1984_s9  ;;  %v1257_v35 = vld [vmem:[#allocation10 + $0x10] sm:$0xff]  ;;  %s1341_s9 = scalar_lea.sflag [#allocation4], %s2258_s2 }
 0x4bf   : > { %v1620_v37 = vpack.c.bf16 %v1258_v36, %v1257_v35 }
 0x4c1   : > { %1621 = vmatpush3.bf16.msra.mxu1 %v1620_v37 }
 0x524   : > { %v665_v14 = vpop.xlane.xlu1 %664 }
 0x525   : > { %1738 = vrcp.f32 %v665_v14 }
 0x528   : > { %v830_v15 = vpop.xlane.xlu0 %829 }
 0x529   : > { %1740 = vrcp.f32 %v830_v15 }
 0x52d   : > { %v995_v17 = vpop.xlane.xlu1 %994 }
 0x52e   : > { %1742 = vrcp.f32 %v995_v17 }
 0x52f   : > { %v1739_v18 = vpop.eup %1738 }
 0x530   : > { %v667_v19 = vmul.f32 %v1739_v18, %v1731_v2 }
 0x531   : > { %v999_v23 = vpop.permute.xlu1 %998 }
 0x532   : > { %1564 = vmatmul.mubr.msk.f32.vlgmr.msra.gmra.mrb[4].mxu0 %vm582_vm3, %v667_v19 }
 0x533   : > { %1573 = vmatprep.mubr.msk.f32.mxu0 %vm1972_vm1, %v1973_v16  ;;  %v1741_v21 = vpop.eup %1740 }
 0x534   : > { %v832_v22 = vmul.f32 %v1741_v21, %v1733_v6 }
 0x535   : > { %v1160_v20 = vpop.xlane.xlu0 %1159  ;;  %v1164_v27 = vpop.permute.xlu1 %1163 }
 0x536   : > { %1744 = vrcp.f32 %v1160_v20 }
 0x538   : > { %v1743_v25 = vpop.eup %1742 }
 0x539   : > { %v834_v24 = vpop.permute.xlu0 %833  ;;  %v997_v26 = vmul.f32 %v1743_v25, %v1735_v9 }
 0x53a   : > { %1572 = vmatpush3.msra.mxu0 %v834_v24 }
 0x53b   : > { %1574 = vmatmul.mubr.msk.f32.vlgmr.msra.gmra.mrb[6].mxu0 %vm582_vm3, %v832_v22  ;;  %1581 = vmatprep.subr.mxu0 %v1973_v16 }
 0x53c   : > { %1582 = vmatpush3.msra.mxu0 %v999_v23  ;;  %1583 = vmatprep.mubr.msk.f32.mxu0 %vm1972_vm1, %v1973_v16 }
 0x53d   : > { %1591 = vmatprep.subr.mxu0 %v1973_v16 }
 0x53f   : > { %1584 = vmatmul.mubr.msk.f32.vlgmr.msra.gmra.mrb[8].mxu0 %vm582_vm3, %v997_v26 }
 0x540   : > { %v1745_v28 = vpop.eup %1744  ;;  %1592 = vmatpush3.msra.mxu0 %v1164_v27  ;;  %1593 = vmatprep.mubr.msk.f32.mxu0 %vm1972_vm1, %v1973_v16 }
 0x541   : > { %v1162_v29 = vmul.f32 %v1745_v28, %v1737_v12 }
 0x543   : > { %1594 = vmatmul.mubr.msk.f32.vlgmr.msra.gmra.mrb[10].mxu0 %vm582_vm3, %v1162_v29 }
 0x605   : > { %v740_v33 = vpop.f32.mrb[4].mxu0 }
 0x606   : > { %v1565_v34 = vpop.f32.mrb[5].mxu0 }
 0x60e   : > { %v905_v38 = vpop.f32.mrb[6].mxu0 }
 0x60f   : > { %1240 = vrot.lane.b32.xlu0 %v905_v38, %s1985_s16  ;;  %v1575_v39 = vpop.f32.mrb[7].mxu0  ;;  %s1888_s16 = scalar_lea.vmem %s2374_s13, 128 }
 0x610   : > { %p1889_p5 = scmp.ne.s32.totalorder %s2374_s13, %s1888_s16 }
 0x612   : > { %v1070_v16 = vpop.f32.mrb[8].mxu0  ;;  %p1890_p9 = pnand %p1889_p5, %p2444_p7 }
 0x613   : > { %1244 = vrot.lane.b32.xlu1 %v1070_v16, %s1986_s25  ;;  %v1585_v40 = vpop.f32.mrb[9].mxu0  ;;  %s1894_s25 = scalar_lea.vmem %s1893_s10, 256 }
 0x614   : > { %p1891_p4 = pneg %p1890_p9  ;;  %p1896_p13 = scmp.lt.s32.totalorder %s1894_s25, %s1888_s16 }
 0x616   : > { %v1235_v41 = vpop.f32.mrb[10].mxu0  ;;  %p1897_p0 = por %p1896_p13, %p1895_p3 }
 0x617   : > { %1248 = vrot.lane.b32.xlu0 %v1235_v41, %s1987_s14  ;;  %v1595_v42 = vpop.f32.mrb[11].mxu0 }
 0x618   : > { %p1898_p2 = pnand %p1897_p0, %p1891_p4 }
 0x681   : > { %v1241_v43 = vpop.permute.xlu0 %1240 }
 0x682   : > { %v1251_v44 = vsel %vm582_vm3, %v740_v33, %v1241_v43 }
 0x685   : > { %v1245_v10 = vpop.permute.xlu1 %1244 }
 0x686   : > { %v1252_v45 = vsel %vm428_vm2, %v1251_v44, %v1245_v10 }
 0x689   : > { %v1249_v46 = vpop.permute.xlu0 %1248 }
 0x68a   : > { %v1254_v47 = vsel %vm1253_vm4, %v1252_v45, %v1249_v46 }
 0x68b   : > { %1605 = vmatmul.mubr.msk.f32.vlgmr.msra.gmra.mrb[8].mxu1 %vm390_vm0, %v1254_v47 }
 0x75e   : > { %v1335_v49 = vpop.f32.mrb[8].mxu1 }
 0x75f   : > { %v1336_v50 = vadd.f32 %v1503_v48, %v1335_v49  ;;  %v1606_v51 = vpop.f32.mrb[9].mxu1 }
 0x761   : > { %1339 = vst [vmem:[%s385_s26] sm:$0xff] %v1336_v50 }
 0x762   : > { %1901 = shalt.err (!%p1898_p2)
}
 0x763   : > { %s1902_s2 = scalar_lea.hbm %s2372_s20, 128  ;;  %s1906_s17 = scalar_lea.hbm %s2424_s8, 256 }
 0x764   : > { %p1903_p8 = scmp.ne.s32.totalorder %s2372_s20, %s1902_s2  ;;  %p1907_p12 = scmp.lt.u32.totalorder %s2372_s20, %s2424_s8 }
 0x765   : > { %p1908_p1 = scmp.lt.u32.totalorder %s1906_s17, %s1902_s2  ;;  %p1910_p5 = scmp.lt.u32.totalorder %s1902_s2, %s2372_s20 }
 0x766   : > { %p1904_p10 = pnand %p1903_p8, %p2444_p7 }
 0x767   : > { %p1909_p6 = por %p1908_p1, %p1907_p12 }
 0x768   : > { %p1905_p11 = pneg %p1904_p10 }
 0x769   : > { %p1911_p9 = por %p1910_p5, %p1909_p6 }
 0x76b   : > { %p1912_p4 = pnand %p1911_p9, %p1905_p11 }
 0x76d   : > { %1915 = shalt.err (!%p1912_p4)
}
 0x76e   : > { %1640 = dma.vmem_to_hbm [thread:$0]  (%p2444_p7), %s2374_s13, 128, %s2372_s20, %s1341_s9  }
 0x76f PF: > { %s1366_s15 = sand.u32 1, %s1950_s27   ;;  %p2445_p3 = scmp.ne.s32.totalorder %s2437_s24, 0 }
 0x770   : > { %p2446_p13 = scmp.ge.s32.totalorder %s1962_s30, 2  ;;  %s1367_s18 = scalar_lea.sflag [#allocation4], %s1366_s15 }
 0x772   : > { %p1660_p0 = pnand %p2446_p13, %p2445_p3 }
 0x774   : > { %1945 = dma.done.wait (!%p1660_p0), %s1367_s18, 128  }
 0x775   : > { %1947 = vsyncadd (!%p1660_p0), %s1367_s18, 4294967168  ;;  %p23_p2 = scmp.ge.s32.totalorder %s2182_s23, 4   ;;  %s2447_s27 = smov %s1954_s28 }
 0x776   : > { %s2448_s28 = smov %s1958_s29  ;;  %s2449_s29 = smov %s2193_s21 }
 0x777   : > { %s2450_s30 = smov %s2182_s23  ;;  %25 = sbr.rel (!%p23_p2) target bundleno = 9 (0x9), region = 116 }
 0x77e   :  { %1372 = vsyncpa [#allocation3], 1 }
 0x77f   :  { %1374 = vsyncpa [#allocation3 + $0x1], 1 }
 0x780   :  { %1375 = vsyncpa [#allocation6], 1 }
 0x781   :  { %1376 = vsyncpa [#allocation9], 1 }
 0x782   :  { %1377 = vsyncpa [#allocation4], 1 }
 0x783   :  { %1379 = vsyncpa [#allocation4 + $0x1], 1 }

</bundles_post_ra>
